<compile_context>
chip_gen: v7x
topology: tpu7x:2x2x1
jax: 0.10.0
libtpu: 0.0.40
codegen_flags: <defaults>
</compile_context>

<pallas_src>
import jax
import jax.numpy as jnp
from jax.experimental import pallas as pl
from jax.experimental.pallas import tpu as pltpu


def ufo_kernel(h_ref, c_ref, w_ref, b_ref, h_out_ref, c_out_ref):
    L = h_ref.shape[-1]
    # Packed projection: one (tm, L) @ (L, 4L) MXU matmul, f32 accumulation.
    z = jnp.dot(h_ref[...], w_ref[...], preferred_element_type=jnp.float32)
    z = z + b_ref[...].astype(jnp.float32)
    # The wrapper pre-scales the u/f/o gate columns of W and b by 0.5, so a
    # single full-width tanh covers all four gates
    # (sigmoid(x) = 0.5 * tanh(x/2) + 0.5): one EUP map per tile.
    t = jnp.tanh(z)
    c_tilde = t[:, 0 * L:1 * L]
    g_u = 0.5 * t[:, 1 * L:2 * L] + 0.5
    g_f = 0.5 * t[:, 2 * L:3 * L] + 0.5
    g_o = 0.5 * t[:, 3 * L:4 * L] + 0.5
    c_new = g_u * c_tilde + g_f * c_ref[...].astype(jnp.float32)
    h_new = g_o * jnp.tanh(c_new)
    h_out_ref[...] = h_new.astype(h_out_ref.dtype)
    c_out_ref[...] = c_new.astype(c_out_ref.dtype)


def _round_up(x, m):
    return ((x + m - 1) // m) * m


def _vmem_cap_bytes():
    # v7x has 64 MiB VMEM per TensorCore: keep scoped VMEM well under it so
    # Mosaic's own scratch still fits.  v5e/v6e have 128 MiB and can go higher.
    try:
        kind = jax.devices()[0].device_kind.lower()
    except Exception:
        kind = ""
    if ("v5" in kind) or ("v6" in kind):
        return 100 * 1024 * 1024
    return 48 * 1024 * 1024


_GATE_SCALES = (1.0, 0.5, 0.5, 0.5)   # tanh gate, then the three sigmoid gates


def _pack_params(w_packed, b_packed, D, P):
    """Gate-grouped (and, if P > 1, block-diagonal lane-packed) weight/bias.

    The sigmoid gates' columns are pre-scaled by 0.5 so the kernel only needs
    one tanh map (sigmoid(x) = 0.5*tanh(x/2) + 0.5).
    """
    L = P * D
    if P == 1:
        scale = jnp.concatenate(
            [jnp.full((1, D), s, w_packed.dtype) for s in _GATE_SCALES], axis=1)
        return w_packed * scale, b_packed * scale.astype(b_packed.dtype)
    eye = jnp.eye(P, dtype=w_packed.dtype)
    w_blocks, b_blocks = [], []
    for g, s in enumerate(_GATE_SCALES):
        wg = w_packed[:, g * D:(g + 1) * D] * jnp.asarray(s, w_packed.dtype)
        bd = eye[:, :, None, None] * wg[None, None, :, :]        # (P,P,D,D)
        w_blocks.append(bd.transpose(0, 2, 1, 3).reshape(L, L))  # block-diag
        bg = b_packed[:, g * D:(g + 1) * D] * jnp.asarray(s, b_packed.dtype)
        b_blocks.append(jnp.tile(bg, (1, P)))
    return jnp.concatenate(w_blocks, axis=1), jnp.concatenate(b_blocks, axis=1)


def ufo_forward(h, c, w_packed, b_packed, *, tm=2048):
    """UFO forward pass.

    h, c:      (..., D) activations (f32 or bf16).
    w_packed:  (D, 4D) = [Wt^T | Wu^T | Wf^T | Wo^T]  (PyTorch W is (out, in)).
    b_packed:  (1, 4D) = [bt | bu | bf | bo].
    Returns (h_new, c_new) with the same shape/dtype as the inputs.
    """
    orig_shape = h.shape
    D = orig_shape[-1]
    assert w_packed.shape == (D, 4 * D)
    assert b_packed.shape == (1, 4 * D)

    h2 = h.reshape(-1, D)
    c2 = c.reshape(-1, D)
    N = h2.shape[0]

    # Lane-dense packing: when D divides 128 put P = 128 // D consecutive
    # positions in one 128-lane row so all loads/stores are full-lane.
    if D < 128 and 128 % D == 0:
        P = 128 // D
    else:
        # TODO(synk): D values that do not divide 128 keep the (possibly
        # lane-masked) unpacked layout.
        P = 1
    L = P * D

    if P > 1:
        Npos = _round_up(N, P)
        if Npos != N:
            h2 = jnp.pad(h2, ((0, Npos - N), (0, 0)))
            c2 = jnp.pad(c2, ((0, Npos - N), (0, 0)))
        h2 = h2.reshape(-1, L)
        c2 = c2.reshape(-1, L)
    Nr = h2.shape[0]

    w_in, b_in = _pack_params(w_packed, b_packed, D, P)

    # Row-tile alignment: 8 sublanes for f32, 16 for bf16 (sublane packing).
    itemsize = jnp.dtype(h.dtype).itemsize
    row_align = 8 * max(1, 4 // itemsize)
    tm = max(row_align, (tm // row_align) * row_align)
    # Keep >= ~4 grid steps when there is enough data so the "parallel" axis
    # can shard row tiles across v7x's two TensorCores, while each step still
    # moves multi-MB of HBM traffic (amortizes the ~0.35us/step overhead).
    tm = min(tm, max(row_align, _round_up(pl.cdiv(Nr, 4), row_align)))
    Np = _round_up(Nr, tm)
    if Np != Nr:
        h2 = jnp.pad(h2, ((0, Np - Nr), (0, 0)))
        c2 = jnp.pad(c2, ((0, Np - Nr), (0, 0)))

    grid = (Np // tm,)
    row_spec = pl.BlockSpec((tm, L), lambda i: (i, 0))
    # Constant index maps: weight/bias blocks stay resident in VMEM across the
    # grid (no per-step re-DMA).
    w_spec = pl.BlockSpec((L, 4 * L), lambda i: (0, 0))
    b_spec = pl.BlockSpec((1, 4 * L), lambda i: (0, 0))
    # Note: if DMA shows up exposed on v5e (slower HBM), the input row_specs
    # can be bumped to pipeline_mode=pl.Buffered(3) at trivial VMEM cost.

    w_bytes = (L * 4 * L + 4 * L) * jnp.dtype(w_in.dtype).itemsize
    est = (4 * 2 * tm * L * itemsize      # double-buffered h/c in + h/c out
           + 2 * w_bytes                  # resident weights + bias
           + 6 * tm * L * 4               # f32 c_new / h_new / gate temporaries
           + 3 * tm * 4 * L * 4)          # f32 z / tanh(z) intermediates
    vmem_limit = int(min(max(2 * est, 16 * 1024 * 1024), _vmem_cap_bytes()))

    h_new, c_new = pl.pallas_call(
        ufo_kernel,
        out_shape=(
            jax.ShapeDtypeStruct((Np, L), h.dtype),
            jax.ShapeDtypeStruct((Np, L), c.dtype),
        ),
        grid_spec=pltpu.PrefetchScalarGridSpec(
            num_scalar_prefetch=0,
            grid=grid,
            in_specs=[row_spec, row_spec, w_spec, b_spec],
            out_specs=[row_spec, row_spec],
        ),
        compiler_params=pltpu.CompilerParams(
            dimension_semantics=("parallel",),  # row tiles shard across v7x TCs
            vmem_limit_bytes=vmem_limit),
    )(h2, c2, w_in, b_in)

    h_new = h_new[:Nr].reshape(-1, D)[:N].reshape(orig_shape)
    c_new = c_new[:Nr].reshape(-1, D)[:N].reshape(orig_shape)
    return h_new, c_new


def ufo_reference(h, c, w_packed, b_packed):
    D = h.shape[-1]
    z = jnp.einsum("...d,de->...e", h.astype(jnp.float32),
                   w_packed.astype(jnp.float32)) + b_packed[0].astype(jnp.float32)
    c_tilde = jnp.tanh(z[..., 0 * D:1 * D])
    g_u = jax.nn.sigmoid(z[..., 1 * D:2 * D])
    g_f = jax.nn.sigmoid(z[..., 2 * D:3 * D])
    g_o = jax.nn.sigmoid(z[..., 3 * D:4 * D])
    c_new = g_u * c_tilde + g_f * c.astype(jnp.float32)
    h_new = g_o * jnp.tanh(c_new)
    return h_new, c_new


if __name__ == "__main__":
    att_dim = 32
    batch, seq = 2, 8

    key = jax.random.PRNGKey(0)
    kh, kc, kw, kb = jax.random.split(key, 4)

    h = jax.random.normal(kh, (batch, seq, att_dim), dtype=jnp.float32)
    c = jax.random.normal(kc, (batch, seq, att_dim), dtype=jnp.float32)

    # Deterministic parameters for the 4 nn.Linear(att_dim, att_dim) layers.
    # PyTorch Linear computes y = x @ W^T + b (W: (out, in)); we directly build
    # the packed (in, 4*out) matrix [Wt^T | Wu^T | Wf^T | Wo^T].
    scale = 1.0 / jnp.sqrt(jnp.float32(att_dim))
    w_packed = scale * jax.random.normal(
        kw, (att_dim, 4 * att_dim), dtype=jnp.float32)
    b_packed = scale * jax.random.normal(
        kb, (1, 4 * att_dim), dtype=jnp.float32)

    # f32, lane-dense packed path (D=32 -> 4 positions per 128-lane row).
    h_new, c_new = ufo_forward(h, c, w_packed, b_packed)
    jax.block_until_ready((h_new, c_new))
    h_ref, c_ref = ufo_reference(h, c, w_packed, b_packed)
    assert jnp.allclose(h_new, h_ref, atol=1e-4, rtol=1e-4)
    assert jnp.allclose(c_new, c_ref, atol=1e-4, rtol=1e-4)

    # bf16 HBM I/O (the op is memory-bound); f32 accumulation/gate math in-kernel.
    hb, cb = h.astype(jnp.bfloat16), c.astype(jnp.bfloat16)
    wb, bb = w_packed.astype(jnp.bfloat16), b_packed.astype(jnp.bfloat16)
    h_b, c_b = ufo_forward(hb, cb, wb, bb)
    jax.block_until_ready((h_b, c_b))
    assert jnp.allclose(h_b.astype(jnp.float32), h_ref, atol=1e-1, rtol=1e-1)
    assert jnp.allclose(c_b.astype(jnp.float32), c_ref, atol=1e-1, rtol=1e-1)

    # Ragged position count: exercises position padding (N % P != 0), the
    # tm-capping logic and a multi-step grid (38 packed rows -> 3 tiles).
    batch2, seq2 = 3, 50
    h3 = jax.random.normal(kh, (batch2, seq2, att_dim), dtype=jnp.float32)
    c3 = jax.random.normal(kc, (batch2, seq2, att_dim), dtype=jnp.float32)
    h3_new, c3_new = ufo_forward(h3, c3, w_packed, b_packed)
    jax.block_until_ready((h3_new, c3_new))
    h3_ref, c3_ref = ufo_reference(h3, c3, w_packed, b_packed)
    assert jnp.allclose(h3_new, h3_ref, atol=1e-4, rtol=1e-4)
    assert jnp.allclose(c3_new, c3_ref, atol=1e-4, rtol=1e-4)

    # D that does not divide 128: exercises the unpacked fallback path.
    d4 = 24
    h4 = jax.random.normal(kh, (2, 5, d4), dtype=jnp.float32)
    c4 = jax.random.normal(kc, (2, 5, d4), dtype=jnp.float32)
    s4 = 1.0 / jnp.sqrt(jnp.float32(d4))
    w4 = s4 * jax.random.normal(kw, (d4, 4 * d4), dtype=jnp.float32)
    b4 = s4 * jax.random.normal(kb, (1, 4 * d4), dtype=jnp.float32)
    h4_new, c4_new = ufo_forward(h4, c4, w4, b4)
    jax.block_until_ready((h4_new, c4_new))
    h4_ref, c4_ref = ufo_reference(h4, c4, w4, b4)
    assert jnp.allclose(h4_new, h4_ref, atol=1e-4, rtol=1e-4)
    assert jnp.allclose(c4_new, c4_ref, atol=1e-4, rtol=1e-4)

    print("KERNEL_OK")
</pallas_src>

<mosaic_0001>
module attributes {stable_mosaic.version = 11 : i64} {
  func.func @ufo_kernel(%arg0: i32, %arg1: memref<8x128xf32, #tpu.memory_space<vmem>>, %arg2: memref<8x128xf32, #tpu.memory_space<vmem>>, %arg3: memref<128x512xf32, #tpu.memory_space<vmem>>, %arg4: memref<1x512xf32, #tpu.memory_space<vmem>>, %arg5: memref<8x128xf32, #tpu.memory_space<vmem>>, %arg6: memref<8x128xf32, #tpu.memory_space<vmem>>) attributes {dimension_semantics = [#tpu.dimension_semantics<parallel>], iteration_bounds = array<i64: 1>, scalar_prefetch = 0 : i64, scratch_operands = 0 : i64, tpu.core_type = #tpu.core_type<tc>, window_params = [{transform_indices = @transform_0, window_bounds = array<i64: 8, 128>}, {transform_indices = @transform_1, window_bounds = array<i64: 8, 128>}, {pipeline_mode = #tpu.pipeline_mode<synchronous>, transform_indices = @transform_2, window_bounds = array<i64: 128, 512>}, {pipeline_mode = #tpu.pipeline_mode<synchronous>, transform_indices = @transform_3, window_bounds = array<i64: 1, 512>}, {transform_indices = @transform_4, window_bounds = array<i64: 8, 128>}, {transform_indices = @transform_5, window_bounds = array<i64: 8, 128>}]} {
    %c0 = arith.constant 0 : index
    %c0_0 = arith.constant 0 : index
    %0 = vector.load %arg1[%c0, %c0_0] : memref<8x128xf32, #tpu.memory_space<vmem>>, vector<8x128xf32>
    %c0_1 = arith.constant 0 : index
    %c0_2 = arith.constant 0 : index
    %1 = vector.load %arg3[%c0_1, %c0_2] : memref<128x512xf32, #tpu.memory_space<vmem>>, vector<128x512xf32>
    %cst = arith.constant dense<0.000000e+00> : vector<8x512xf32>
    %2 = tpu.matmul %0, %1, %cst {dimension_numbers = #tpu.dot_dimension_numbers<[1], [0], [0], [1], [0, 0, 1, 1], [], []>} : vector<8x128xf32>, vector<128x512xf32>, vector<8x512xf32> -> vector<8x512xf32>
    %c0_3 = arith.constant 0 : index
    %c0_4 = arith.constant 0 : index
    %3 = vector.load %arg4[%c0_3, %c0_4] : memref<1x512xf32, #tpu.memory_space<vmem>>, vector<1x512xf32>
    %4 = vector.broadcast %3 : vector<1x512xf32> to vector<8x512xf32>
    %5 = arith.addf %2, %4 : vector<8x512xf32>
    %6 = math.tanh %5 : vector<8x512xf32>
    %7 = vector.extract_strided_slice %6 {offsets = [0, 0], sizes = [8, 128], strides = [1, 1]} : vector<8x512xf32> to vector<8x128xf32>
    %8 = vector.extract_strided_slice %6 {offsets = [0, 128], sizes = [8, 128], strides = [1, 1]} : vector<8x512xf32> to vector<8x128xf32>
    %cst_5 = arith.constant 5.000000e-01 : f32
    %9 = vector.broadcast %cst_5 : f32 to vector<8x128xf32>
    %10 = arith.mulf %9, %8 : vector<8x128xf32>
    %cst_6 = arith.constant 5.000000e-01 : f32
    %11 = vector.broadcast %cst_6 : f32 to vector<8x128xf32>
    %12 = arith.addf %10, %11 : vector<8x128xf32>
    %13 = vector.extract_strided_slice %6 {offsets = [0, 256], sizes = [8, 128], strides = [1, 1]} : vector<8x512xf32> to vector<8x128xf32>
    %cst_7 = arith.constant 5.000000e-01 : f32
    %14 = vector.broadcast %cst_7 : f32 to vector<8x128xf32>
    %15 = arith.mulf %14, %13 : vector<8x128xf32>
    %cst_8 = arith.constant 5.000000e-01 : f32
    %16 = vector.broadcast %cst_8 : f32 to vector<8x128xf32>
    %17 = arith.addf %15, %16 : vector<8x128xf32>
    %18 = vector.extract_strided_slice %6 {offsets = [0, 384], sizes = [8, 128], strides = [1, 1]} : vector<8x512xf32> to vector<8x128xf32>
    %cst_9 = arith.constant 5.000000e-01 : f32
    %19 = vector.broadcast %cst_9 : f32 to vector<8x128xf32>
    %20 = arith.mulf %19, %18 : vector<8x128xf32>
    %cst_10 = arith.constant 5.000000e-01 : f32
    %21 = vector.broadcast %cst_10 : f32 to vector<8x128xf32>
    %22 = arith.addf %20, %21 : vector<8x128xf32>
    %23 = arith.mulf %12, %7 : vector<8x128xf32>
    %c0_11 = arith.constant 0 : index
    %c0_12 = arith.constant 0 : index
    %24 = vector.load %arg2[%c0_11, %c0_12] : memref<8x128xf32, #tpu.memory_space<vmem>>, vector<8x128xf32>
    %25 = arith.mulf %17, %24 : vector<8x128xf32>
    %26 = arith.addf %23, %25 : vector<8x128xf32>
    %27 = math.tanh %26 : vector<8x128xf32>
    %28 = arith.mulf %22, %27 : vector<8x128xf32>
    %c0_13 = arith.constant 0 : index
    %c0_14 = arith.constant 0 : index
    %29 = vector.load %arg5[%c0_13, %c0_14] : memref<8x128xf32, #tpu.memory_space<vmem>>, vector<8x128xf32>
    tpu.vector_store %arg5[%c0_13, %c0_14], %28 {strides = array<i32>} : memref<8x128xf32, #tpu.memory_space<vmem>>, vector<8x128xf32>,
    %c0_15 = arith.constant 0 : index
    %c0_16 = arith.constant 0 : index
    %30 = vector.load %arg6[%c0_15, %c0_16] : memref<8x128xf32, #tpu.memory_space<vmem>>, vector<8x128xf32>
    tpu.vector_store %arg6[%c0_15, %c0_16], %26 {strides = array<i32>} : memref<8x128xf32, #tpu.memory_space<vmem>>, vector<8x128xf32>,
    return
  }
  func.func @transform_0(%arg0: i32) -> (i32, i32) {
    %c0_i32 = arith.constant 0 : i32
    %c0_i32_0 = arith.constant 0 : i32
    return %arg0, %c0_i32 : i32, i32
  }
  func.func @transform_1(%arg0: i32) -> (i32, i32) {
    %c0_i32 = arith.constant 0 : i32
    %c0_i32_0 = arith.constant 0 : i32
    return %arg0, %c0_i32 : i32, i32
  }
  func.func @transform_2(%arg0: i32) -> (i32, i32) {
    %c0_i32 = arith.constant 0 : i32
    %c0_i32_0 = arith.constant 0 : i32
    %c0_i32_1 = arith.constant 0 : i32
    return %c0_i32, %c0_i32_0 : i32, i32
  }
  func.func @transform_3(%arg0: i32) -> (i32, i32) {
    %c0_i32 = arith.constant 0 : i32
    %c0_i32_0 = arith.constant 0 : i32
    %c0_i32_1 = arith.constant 0 : i32
    return %c0_i32, %c0_i32_0 : i32, i32
  }
  func.func @transform_4(%arg0: i32) -> (i32, i32) {
    %c0_i32 = arith.constant 0 : i32
    %c0_i32_0 = arith.constant 0 : i32
    return %arg0, %c0_i32 : i32, i32
  }
  func.func @transform_5(%arg0: i32) -> (i32, i32) {
    %c0_i32 = arith.constant 0 : i32
    %c0_i32_0 = arith.constant 0 : i32
    return %arg0, %c0_i32 : i32, i32
  }
}

</mosaic_0001>

<bundles_post_ra>
// kernel: tpu_custom_call.1
= control target key start
LH: loop header
LB: loop body
LE: loop exit
PB: predicated region body
PF: predicated region fallthrough
CT: control target
= control target key end

     0   :  { %11 = vsyncpa [#allocation3], 0  ;;  %s636_s0 = inlined_call_operand.hbm [shape: f32[8,128], index: 0, kind: input, shape index: {}]   ;;  %s637_s1 = inlined_call_operand.hbm [shape: f32[8,128], index: 1, kind: input, shape index: {}]   ;;  %s638_s2 = inlined_call_operand.hbm [shape: f32[128,512], index: 2, kind: input, shape index: {}]   ;;  %s639_s3 = inlined_call_operand.vmem [shape: f32[1,512], index: 3, kind: input, shape index: {}]   ;;  %s640_s4 = inlined_call_operand.hbm [shape: f32[8,128], index: 4, kind: output, shape index: {0}]   ;;  %s641_s5 = inlined_call_operand.hbm [shape: f32[8,128], index: 5, kind: output, shape index: {1}]  }
   0x1   :  { %12 = vsyncpa [#allocation6], 0 }
   0x2   :  { %13 = vsyncpa [#allocation4], 0 }
   0x3   :  { %14 = vsyncpa [#allocation10], 0  ;;  %s535_s18 = smov [#allocation5]   ;;  %s536_s20 = smov [#allocation2]  }
   0x4   :  { %s31_s19 = sshll.u32 %s535_s18, 4  ;;  %s21_s21 = sshll.u32 %s536_s20, 4  ;;  %s32_s19 = int_to_ptr.vmem [resolvable:$true] %s31_s19  ;;  %s22_s21 = int_to_ptr.vmem [resolvable:$true] %s21_s21 }
   0x5   :  { %s417_s24 = scalar_lea.hbm %s637_s1, 128 }
   0x6   :  { %p418_p0 = scmp.ne.s32.totalorder %s637_s1, %s417_s24  ;;  %p421_p1 = scmp.lt.u32.totalorder %s417_s24, %s637_s1 }
   0x8   :  { %p423_p2 = pnand %p421_p1, %p418_p0 }
   0xa   :  { %426 = shalt.err (!%p423_p2)
}
   0xb   :  { %s427_s29 = scalar_lea.vmem %s32_s19, 128  ;;  %p432_p4 = scmp.lt.s32.totalorder %s32_s19, %s32_s19 }
   0xc   :  { %p428_p3 = scmp.ne.s32.totalorder %s32_s19, %s427_s29  ;;  %p433_p5 = scmp.lt.s32.totalorder %s427_s29, %s427_s29 }
   0xe   :  { %p434_p6 = por %p433_p5, %p432_p4 }
  0x10   :  { %p435_p7 = pnand %p434_p6, %p428_p3 }
  0x12   :  { %438 = shalt.err (!%p435_p7)
}
  0x13   :  { %34 = dma.hbm_to_vmem [thread:$0]  %s637_s1, 128, %s32_s19, [#allocation6]  }
  0x14   :  { %s439_s9 = scalar_lea.hbm %s636_s0, 128 }
  0x15   :  { %p440_p8 = scmp.ne.s32.totalorder %s636_s0, %s439_s9  ;;  %p443_p9 = scmp.lt.u32.totalorder %s439_s9, %s636_s0 }
  0x17   :  { %p445_p10 = pnand %p443_p9, %p440_p8 }
  0x19   :  { %448 = shalt.err (!%p445_p10)
}
  0x1a   :  { %s449_s14 = scalar_lea.vmem %s22_s21, 128  ;;  %p454_p12 = scmp.lt.s32.totalorder %s22_s21, %s22_s21 }
  0x1b   :  { %p450_p11 = scmp.ne.s32.totalorder %s22_s21, %s449_s14  ;;  %p455_p13 = scmp.lt.s32.totalorder %s449_s14, %s449_s14 }
  0x1d   :  { %p456_p0 = por %p455_p13, %p454_p12 }
  0x1f   :  { %p457_p1 = pnand %p456_p0, %p450_p11 }
  0x21   :  { %460 = shalt.err (!%p457_p1)
}
  0x22   :  { %24 = dma.hbm_to_vmem [thread:$0]  %s636_s0, 128, %s22_s21, [#allocation3]  }
  0x23   :  { %s537_s16 = smov [#allocation7]   ;;  %s461_s20 = scalar_lea.hbm %s638_s2, 8192 }
  0x24   :  { %s40_s17 = sshll.u32 %s537_s16, 4  ;;  %p462_p2 = scmp.ne.s32.totalorder %s638_s2, %s461_s20  ;;  %s41_s17 = int_to_ptr.vmem [resolvable:$true] %s40_s17 }
  0x25   :  { %p465_p3 = scmp.lt.u32.totalorder %s461_s20, %s638_s2 }
  0x27   :  { %p467_p4 = pnand %p465_p3, %p462_p2 }
  0x29   :  { %470 = shalt.err (!%p467_p4)
}
  0x2a   :  { %s471_s26 = scalar_lea.vmem %s41_s17, 8192  ;;  %p476_p6 = scmp.lt.s32.totalorder %s41_s17, %s41_s17 }
  0x2b   :  { %p472_p5 = scmp.ne.s32.totalorder %s41_s17, %s471_s26  ;;  %p477_p7 = scmp.lt.s32.totalorder %s471_s26, %s471_s26 }
  0x2d   :  { %p478_p8 = por %p477_p7, %p476_p6 }
  0x2f   :  { %p479_p9 = pnand %p478_p8, %p472_p5 }
  0x31   :  { %482 = shalt.err (!%p479_p9)
}
  0x32   :  { %s538_s0 = smov 512   ;;  %s539_s21 = smov 32  }
  0x33   :  { %46 = dma.hbm_to_vmem [thread:$0]  %s638_s2, 8192, %s41_s17, [#allocation6], %s538_s0, %s538_s0, %s539_s21  }
  0x34   :  { %527 = dma.done.wait [#allocation3], 128  }
  0x35   :  { %528 = vsyncadd [#allocation3], 4294967168 }
  0x36   :  { %529 = dma.done.wait [#allocation6], 8320  }
  0x37   :  { %530 = vsyncadd [#allocation6], 4294958976  ;;  %v540_v0 = vmov 0.0   ;;  %v60_v1 = vld [vmem:[#allocation7 + $0x8] sm:$0xff]  ;;  %v62_v3 = vld [vmem:[#allocation7 + $0x18] sm:$0xff] }
  0x38   :  { %209 = vmatprep.mubr.f32.mxu0 %v540_v0  ;;  %280 = vmatprep.mubr.f32.mxu1 %v540_v0  ;;  %v64_v2 = vld [vmem:[#allocation7 + $0x28] sm:$0xff]  ;;  %v66_v5 = vld [vmem:[#allocation7 + $0x38] sm:$0xff]  ;;  %v59_v6 = vld [vmem:[#allocation7] sm:$0xff] }
  0x39   :  { %v335_v4 = vpack.c.bf16 %v64_v2, %v60_v1  ;;  %v63_v7 = vld [vmem:[#allocation7 + $0x20] sm:$0xff]  ;;  %v367_v8 = vpack.c.bf16 %v66_v5, %v62_v3  ;;  %v61_v10 = vld [vmem:[#allocation7 + $0x10] sm:$0xff]  ;;  %v68_v12 = vld [vmem:[#allocation7 + $0x48] sm:$0xff] }
  0x3a   :  { %v337_v9 = vpack.c.bf16 %v63_v7, %v59_v6  ;;  %v65_v11 = vld [vmem:[#allocation7 + $0x30] sm:$0xff]  ;;  %v72_v14 = vld [vmem:[#allocation7 + $0x68] sm:$0xff]  ;;  %v70_v15 = vld [vmem:[#allocation7 + $0x58] sm:$0xff] }
  0x3b   :  { %336 = vmatprep.subr.bf16.mxu0 %v335_v4  ;;  %v369_v13 = vpack.c.bf16 %v65_v11, %v61_v10  ;;  %v74_v16 = vld [vmem:[#allocation7 + $0x78] sm:$0xff]  ;;  %368 = vmatprep.subr.bf16.mxu1 %v367_v8  ;;  %v339_v17 = vpack.c.bf16 %v72_v14, %v68_v12  ;;  %v67_v19 = vld [vmem:[#allocation7 + $0x40] sm:$0xff]  ;;  %v69_v21 = vld [vmem:[#allocation7 + $0x50] sm:$0xff] }
  0x3c   :  { %338 = vmatpush1.bf16.msra.mxu0 %v337_v9  ;;  %v371_v18 = vpack.c.bf16 %v74_v16, %v70_v15  ;;  %v71_v20 = vld [vmem:[#allocation7 + $0x60] sm:$0xff]  ;;  %v73_v23 = vld [vmem:[#allocation7 + $0x70] sm:$0xff]  ;;  %v76_v24 = vld [vmem:[#allocation7 + $0x88] sm:$0xff] }
  0x3d   :  { %370 = vmatpush1.bf16.msra.mxu1 %v369_v13  ;;  %v341_v22 = vpack.c.bf16 %v71_v20, %v67_v19  ;;  %v80_v25 = vld [vmem:[#allocation7 + $0xa8] sm:$0xff]  ;;  %340 = vmatprep.subr.bf16.mxu0 %v339_v17  ;;  %v373_v26 = vpack.c.bf16 %v73_v23, %v69_v21  ;;  %v78_v28 = vld [vmem:[#allocation7 + $0x98] sm:$0xff]  ;;  %v75_v30 = vld [vmem:[#allocation7 + $0x80] sm:$0xff] }
  0x3e   :  { %372 = vmatprep.subr.bf16.mxu1 %v371_v18  ;;  %v343_v27 = vpack.c.bf16 %v80_v25, %v76_v24  ;;  %v82_v29 = vld [vmem:[#allocation7 + $0xb8] sm:$0xff]  ;;  %v79_v32 = vld [vmem:[#allocation7 + $0xa0] sm:$0xff]  ;;  %v77_v33 = vld [vmem:[#allocation7 + $0x90] sm:$0xff] }
  0x3f   :  { %v375_v31 = vpack.c.bf16 %v82_v29, %v78_v28  ;;  %v81_v34 = vld [vmem:[#allocation7 + $0xb0] sm:$0xff]  ;;  %v345_v35 = vpack.c.bf16 %v79_v32, %v75_v30  ;;  %v84_v36 = vld [vmem:[#allocation7 + $0xc8] sm:$0xff]  ;;  %v86_v38 = vld [vmem:[#allocation7 + $0xd8] sm:$0xff] }
  0x40   :  { %342 = vmatpush1.bf16.msra.mxu0 %v341_v22  ;;  %v88_v37 = vld [vmem:[#allocation7 + $0xe8] sm:$0xff]  ;;  %v377_v39 = vpack.c.bf16 %v81_v34, %v77_v33  ;;  %v90_v41 = vld [vmem:[#allocation7 + $0xf8] sm:$0xff]  ;;  %v83_v42 = vld [vmem:[#allocation7 + $0xc0] sm:$0xff]  ;;  %v125_v34 = vlaneseq }
  0x41   :  { %374 = vmatpush1.bf16.msra.mxu1 %v373_v26  ;;  %344 = vmatprep.subr.bf16.mxu0 %v343_v27  ;;  %v347_v40 = vpack.c.bf16 %v88_v37, %v84_v36  ;;  %v87_v43 = vld [vmem:[#allocation7 + $0xe0] sm:$0xff]  ;;  %v379_v44 = vpack.c.bf16 %v90_v41, %v86_v38  ;;  %v85_v45 = vld [vmem:[#allocation7 + $0xd0] sm:$0xff]  ;;  %v92_v47 = vld [vmem:[#allocation7 + $0x108] sm:$0xff] }
  0x42   :  { %376 = vmatprep.subr.bf16.mxu1 %v375_v31  ;;  %v89_v46 = vld [vmem:[#allocation7 + $0xf0] sm:$0xff]  ;;  %v96_v48 = vld [vmem:[#allocation7 + $0x128] sm:$0xff]  ;;  %v94_v49 = vld [vmem:[#allocation7 + $0x118] sm:$0xff]  ;;  %v349_v51 = vpack.c.bf16 %v87_v43, %v83_v42 }
  0x43   :  { %v98_v50 = vld [vmem:[#allocation7 + $0x138] sm:$0xff]  ;;  %v381_v52 = vpack.c.bf16 %v89_v46, %v85_v45  ;;  %v351_v53 = vpack.c.bf16 %v96_v48, %v92_v47  ;;  %v91_v54 = vld [vmem:[#allocation7 + $0x100] sm:$0xff]  ;;  %v93_v56 = vld [vmem:[#allocation7 + $0x110] sm:$0xff] }
  0x44   :  { %346 = vmatpush1.bf16.msra.mxu0 %v345_v35  ;;  %v95_v55 = vld [vmem:[#allocation7 + $0x120] sm:$0xff]  ;;  %v383_v57 = vpack.c.bf16 %v98_v50, %v94_v49  ;;  %v97_v58 = vld [vmem:[#allocation7 + $0x130] sm:$0xff]  ;;  %v100_v59 = vld [vmem:[#allocation7 + $0x148] sm:$0xff]  ;;  %v126_v35 = vshrl.u32 %v125_v34, 7 }
  0x45   :  { %378 = vmatpush1.bf16.msra.mxu1 %v377_v39  ;;  %348 = vmatprep.subr.bf16.mxu0 %v347_v40  ;;  %v104_v60 = vld [vmem:[#allocation7 + $0x168] sm:$0xff]  ;;  %v102_v61 = vld [vmem:[#allocation7 + $0x158] sm:$0xff]  ;;  %v353_v63 = vpack.c.bf16 %v95_v55, %v91_v54  ;;  %v385_v0 = vpack.c.bf16 %v97_v58, %v93_v56  ;;  %v99_v2 = vld [vmem:[#allocation7 + $0x140] sm:$0xff] }
  0x46   :  { %380 = vmatprep.subr.bf16.mxu1 %v379_v44  ;;  %v106_v62 = vld [vmem:[#allocation7 + $0x178] sm:$0xff]  ;;  %v355_v1 = vpack.c.bf16 %v104_v60, %v100_v59  ;;  %v103_v3 = vld [vmem:[#allocation7 + $0x160] sm:$0xff]  ;;  %v101_v4 = vld [vmem:[#allocation7 + $0x150] sm:$0xff]  ;;  %v135_v36 = vsub.s32 2, %v126_v35  ;;  %v131_v37 = vsub.s32 1, %v126_v35  ;;  %v127_v39 = vsub.s32 0, %v126_v35 }
  0x47   :  { %v387_v5 = vpack.c.bf16 %v106_v62, %v102_v61  ;;  %v105_v6 = vld [vmem:[#allocation7 + $0x170] sm:$0xff]  ;;  %v108_v7 = vld [vmem:[#allocation7 + $0x188] sm:$0xff]  ;;  %v110_v9 = vld [vmem:[#allocation7 + $0x198] sm:$0xff]  ;;  %v357_v11 = vpack.c.bf16 %v103_v3, %v99_v2  ;;  %v139_v49 = vsub.s32 3, %v126_v35 }
  0x48   :  { %350 = vmatpush1.bf16.msra.mxu0 %v349_v51  ;;  %v112_v8 = vld [vmem:[#allocation7 + $0x1a8] sm:$0xff]  ;;  %v114_v10 = vld [vmem:[#allocation7 + $0x1b8] sm:$0xff]  ;;  %v389_v12 = vpack.c.bf16 %v105_v6, %v101_v4  ;;  %v107_v14 = vld [vmem:[#allocation7 + $0x180] sm:$0xff] }
  0x49   :  { %382 = vmatpush1.bf16.msra.mxu1 %v381_v52  ;;  %352 = vmatprep.subr.bf16.mxu0 %v351_v53  ;;  %v359_v13 = vpack.c.bf16 %v112_v8, %v108_v7  ;;  %v111_v15 = vld [vmem:[#allocation7 + $0x1a0] sm:$0xff]  ;;  %v109_v16 = vld [vmem:[#allocation7 + $0x190] sm:$0xff]  ;;  %v391_v17 = vpack.c.bf16 %v114_v10, %v110_v9  ;;  %v116_v19 = vld [vmem:[#allocation7 + $0x1c8] sm:$0xff] }
  0x4a   :  { %384 = vmatprep.subr.bf16.mxu1 %v383_v57  ;;  %v113_v18 = vld [vmem:[#allocation7 + $0x1b0] sm:$0xff]  ;;  %v120_v20 = vld [vmem:[#allocation7 + $0x1e8] sm:$0xff]  ;;  %v118_v21 = vld [vmem:[#allocation7 + $0x1d8] sm:$0xff]  ;;  %v361_v23 = vpack.c.bf16 %v111_v15, %v107_v14 }
  0x4b   :  { %v122_v22 = vld [vmem:[#allocation7 + $0x1f8] sm:$0xff]  ;;  %v393_v24 = vpack.c.bf16 %v113_v18, %v109_v16  ;;  %v363_v25 = vpack.c.bf16 %v120_v20, %v116_v19  ;;  %v115_v26 = vld [vmem:[#allocation7 + $0x1c0] sm:$0xff]  ;;  %v117_v29 = vld [vmem:[#allocation7 + $0x1d0] sm:$0xff] }
  0x4c   :  { %354 = vmatpush1.bf16.msra.mxu0 %v353_v63  ;;  %v119_v27 = vld [vmem:[#allocation7 + $0x1e0] sm:$0xff]  ;;  %v395_v28 = vpack.c.bf16 %v122_v22, %v118_v21  ;;  %v121_v30 = vld [vmem:[#allocation7 + $0x1f0] sm:$0xff]  ;;  %v298_v56 = vld [vmem:[#allocation5] sm:$0xff] }
  0x4d   :  { %386 = vmatpush1.bf16.msra.mxu1 %v385_v0  ;;  %356 = vmatprep.subr.bf16.mxu0 %v355_v1  ;;  %v365_v31 = vpack.c.bf16 %v119_v27, %v115_v26  ;;  %v397_v32 = vpack.c.bf16 %v121_v30, %v117_v29  ;;  %v58_v33 = vld [vmem:[#allocation2] sm:$0xff] }
  0x4e   :  { %388 = vmatprep.subr.bf16.mxu1 %v387_v5  ;;  %v123_v38 = vld [vmem:[%s639_s3] sm:$0xf]  ;;  %s541_s3 = smov [#allocation9]  }
  0x4f   :  { %v136_v40 = vrot.slane %v123_v38, %v135_v36  ;;  %v132_v41 = vrot.slane %v123_v38, %v131_v37  ;;  %v128_v43 = vrot.slane %v123_v38, %v127_v39  ;;  %v140_v51 = vrot.slane %v123_v38, %v139_v49  ;;  %s321_s30 = sshll.u32 %s541_s3, 4  ;;  %s322_s30 = int_to_ptr.vmem [resolvable:$true] %s321_s30 }
  0x50   :  { %358 = vmatpush1.bf16.msra.mxu0 %v357_v11  ;;  %s483_s6 = scalar_lea.vmem %s322_s30, 128  ;;  %p488_p11 = scmp.lt.s32.totalorder %s322_s30, %s322_s30 }
  0x51   :  { %390 = vmatpush1.bf16.msra.mxu1 %v389_v12  ;;  %360 = vmatprep.subr.bf16.mxu0 %v359_v13  ;;  %p484_p10 = scmp.ne.s32.totalorder %s322_s30, %s483_s6  ;;  %p489_p12 = scmp.lt.s32.totalorder %s483_s6, %s483_s6 }
  0x52   :  { %392 = vmatprep.subr.bf16.mxu1 %v391_v17 }
  0x53   :  { %p490_p13 = por %p489_p12, %p488_p11 }
  0x54   :  { %362 = vmatpush1.bf16.msra.mxu0 %v361_v23 }
  0x55   :  { %394 = vmatpush1.bf16.msra.mxu1 %v393_v24  ;;  %364 = vmatprep.subr.bf16.mxu0 %v363_v25  ;;  %p491_p0 = pnand %p490_p13, %p484_p10 }
  0x56   :  { %396 = vmatprep.subr.bf16.mxu1 %v395_v28 }
  0x58   :  { %366 = vmatpush1.bf16.msra.mxu0 %v365_v31 }
  0x59   :  { %398 = vmatpush1.bf16.msra.mxu1 %v397_v32 }
  0x5b   :  { %210 = vmatmul.mubr.f32.vlgmr.msra.gmra.mrb[0].mxu0 %v58_v33 }
  0x5c   :  { %281 = vmatmul.mubr.f32.vlgmr.msra.gmra.mrb[0].mxu1 %v58_v33 }
 0x12e   :  { %v211_v42 = vpop.f32.mrb[0].mxu0 }
 0x12f   :  { %v282_v44 = vpop.f32.mrb[0].mxu1  ;;  %v213_v45 = vpop.f32.mrb[1].mxu0  ;;  %v212_v50 = vadd.f32 %v211_v42, %v128_v43 }
 0x130   :  { %v283_v46 = vadd.f32 %v282_v44, %v136_v40  ;;  %v214_v47 = vadd.f32 %v213_v45, %v132_v41  ;;  %v284_v48 = vpop.f32.mrb[1].mxu1 }
 0x131   :  { %v285_v52 = vadd.f32 %v284_v48, %v140_v51 }
 0x132   :  { %407 = vtanh.f32 %v283_v46 }
 0x133   :  { %409 = vtanh.f32 %v214_v47 }
 0x134   :  { %411 = vtanh.f32 %v212_v50 }
 0x135   :  { %413 = vtanh.f32 %v285_v52 }
 0x13c   :  { %v408_v53 = vpop.eup %407 }
 0x13d   :  { %v410_v54 = vpop.eup %409  ;;  %v293_v55 = vmul.f32 0.5, %v408_v53 }
 0x13e   :  { %v291_v57 = vmul.f32 0.5, %v410_v54  ;;  %v412_v60 = vpop.eup %411 }
 0x13f   :  { %v294_v58 = vadd.f32 0.5, %v293_v55 }
 0x140   :  { %v292_v59 = vadd.f32 0.5, %v291_v57 }
 0x141   :  { %v299_v61 = vmul.f32 %v298_v56, %v294_v58 }
 0x142   :  { %v297_v62 = vmul.f32 %v412_v60, %v292_v59 }
 0x144   :  { %v300_v63 = vadd.f32 %v299_v61, %v297_v62 }
 0x146   :  { %415 = vtanh.f32 %v300_v63  ;;  %304 = vst [vmem:[#allocation9] sm:$0xff] %v300_v63 }
 0x147   :  { %494 = shalt.err (!%p491_p0)
}
 0x148   :  { %s495_s9 = scalar_lea.hbm %s641_s5, 128 }
 0x149   :  { %p496_p1 = scmp.ne.s32.totalorder %s641_s5, %s495_s9  ;;  %p499_p2 = scmp.lt.u32.totalorder %s495_s9, %s641_s5 }
 0x14b   :  { %p501_p3 = pnand %p499_p2, %p496_p1 }
 0x14d   :  { %504 = shalt.err (!%p501_p3)
}
 0x14e   :  { %324 = dma.vmem_to_hbm [thread:$0]  %s322_s30, 128, %s641_s5, [#allocation10]   ;;  %v414_v0 = vpop.eup %413 }
 0x14f   :  { %v295_v1 = vmul.f32 0.5, %v414_v0  ;;  %s542_s15 = smov [#allocation8]  }
 0x150   :  { %s311_s16 = sshll.u32 %s542_s15, 4  ;;  %v416_v3 = vpop.eup %415  ;;  %s312_s16 = int_to_ptr.vmem [resolvable:$true] %s311_s16 }
 0x151   :  { %v296_v2 = vadd.f32 0.5, %v295_v1  ;;  %s505_s17 = scalar_lea.vmem %s312_s16, 128  ;;  %p510_p5 = scmp.lt.s32.totalorder %s312_s16, %s312_s16 }
 0x152   :  { %p506_p4 = scmp.ne.s32.totalorder %s312_s16, %s505_s17  ;;  %p511_p6 = scmp.lt.s32.totalorder %s505_s17, %s505_s17 }
 0x153   :  { %v302_v4 = vmul.f32 %v416_v3, %v296_v2 }
 0x154   :  { %p512_p7 = por %p511_p6, %p510_p5 }
 0x155   :  { %303 = vst [vmem:[#allocation8] sm:$0xff] %v302_v4 }
 0x156   :  { %p513_p8 = pnand %p512_p7, %p506_p4 }
 0x158   :  { %516 = shalt.err (!%p513_p8)
}
 0x159   :  { %s517_s5 = scalar_lea.hbm %s640_s4, 128 }
 0x15a   :  { %p518_p9 = scmp.ne.s32.totalorder %s640_s4, %s517_s5  ;;  %p521_p10 = scmp.lt.u32.totalorder %s517_s5, %s640_s4 }
 0x15c   :  { %p523_p11 = pnand %p521_p10, %p518_p9 }
 0x15e   :  { %526 = shalt.err (!%p523_p11)
}
 0x15f   :  { %314 = dma.vmem_to_hbm [thread:$0]  %s312_s16, 128, %s640_s4, [#allocation4]  }
 0x160   :  { %531 = dma.done.wait [#allocation4], 128  }
 0x161   :  { %532 = vsyncadd [#allocation4], 4294967168 }
 0x162   :  { %533 = dma.done.wait [#allocation10], 128  }
 0x163   :  { %534 = vsyncadd [#allocation10], 4294967168 }
 0x164   :  { %331 = vsyncpa [#allocation3], 1 }
 0x165   :  { %332 = vsyncpa [#allocation6], 1 }
 0x166   :  { %333 = vsyncpa [#allocation4], 1 }
 0x167   :  { %334 = vsyncpa [#allocation10], 1 }

</bundles_post_ra>
